<compile_context>
chip_gen: v7x
topology: tpu7x:2x2x1
jax: 0.10.0
libtpu: 0.0.40
codegen_flags: <defaults>
</compile_context>

<pallas_src>
import functools

import jax
import jax.numpy as jnp
from jax.experimental import pallas as pl
from jax.experimental.pallas import tpu as pltpu

GAMMA = 1.5
ALPHA = 0.25

_LANES = 128
_MAX_TILE_ROWS = 2048  # (2048, 128) f32 = 1 MiB per input block


def _round_up(x, m):
    return ((x + m - 1) // m) * m


def _focal_loss_kernel(pred_ref, true_ref, out_ref, *,
                       tile_rows, total_count, needs_mask, gamma, alpha):
    x = pred_ref[...].astype(jnp.float32)
    y = true_ref[...].astype(jnp.float32)

    # Shared transcendental: t = exp(-|x|) feeds both the stable BCE and the
    # sigmoid (avoids a second exp per element).
    t = jnp.exp(-jnp.abs(x))

    # Numerically stable BCE-with-logits, reduction='none':
    #   max(x, 0) - x*y + log(1 + exp(-|x|))
    bce = jnp.maximum(x, 0.0) - x * y + jnp.log1p(t)

    # sigmoid(x) = 1/(1+t) for x >= 0, t/(1+t) for x < 0   (t = exp(-|x|))
    p = jnp.where(x >= 0.0, 1.0, t) / (1.0 + t)

    p_t = y * p + (1.0 - y) * (1.0 - p)
    alpha_factor = y * alpha + (1.0 - y) * (1.0 - alpha)
    z = 1.0 - p_t
    if gamma == 1.5:
        modulating_factor = z * jnp.sqrt(z)      # z**1.5 with 1 EUP op
    else:
        modulating_factor = z ** gamma

    loss = bce * alpha_factor * modulating_factor

    if needs_mask:
        row = (jax.lax.broadcasted_iota(jnp.int32, loss.shape, 0)
               + pl.program_id(0) * tile_rows)
        col = jax.lax.broadcasted_iota(jnp.int32, loss.shape, 1)
        valid = (row * _LANES + col) < total_count
        loss = jnp.where(valid, loss, 0.0)

    # Per-block partial reduction down to a single (8, 128) vreg:
    # pure VPU vreg adds, no carried state, no per-step XLU/SMEM scalar.
    partial = loss.reshape(tile_rows // 8, 8, _LANES).sum(axis=0)
    out_ref[...] = partial.reshape(1, 8, _LANES)


def focal_loss(pred, true, *, gamma=GAMMA, alpha=ALPHA, reduction="mean"):
    """Focal loss over BCE-with-logits. Returns a scalar float32 (mean/sum)."""
    assert pred.shape == true.shape
    total = pred.size

    flat_p = pred.reshape(-1)
    flat_t = true.reshape(-1)

    rows = -(-total // _LANES)                       # ceil(total / 128)
    tile_rows = min(_MAX_TILE_ROWS, _round_up(rows, 8))
    padded_rows = _round_up(rows, tile_rows)
    pad = padded_rows * _LANES - total
    if pad:
        flat_p = jnp.pad(flat_p, (0, pad))
        flat_t = jnp.pad(flat_t, (0, pad))

    pred2d = flat_p.reshape(padded_rows, _LANES)
    true2d = flat_t.reshape(padded_rows, _LANES)
    num_blocks = padded_rows // tile_rows

    kernel = functools.partial(
        _focal_loss_kernel,
        tile_rows=tile_rows,
        total_count=total,
        needs_mask=(pad != 0),
        gamma=gamma,
        alpha=alpha,
    )

    partials = pl.pallas_call(
        kernel,
        out_shape=jax.ShapeDtypeStruct((num_blocks, 8, _LANES), jnp.float32),
        grid_spec=pltpu.PrefetchScalarGridSpec(
            num_scalar_prefetch=0,
            grid=(num_blocks,),
            in_specs=[
                pl.BlockSpec((tile_rows, _LANES), lambda i: (i, 0)),
                pl.BlockSpec((tile_rows, _LANES), lambda i: (i, 0)),
            ],
            out_specs=pl.BlockSpec((1, 8, _LANES), lambda i: (i, 0, 0)),
        ),
        compiler_params=pltpu.CompilerParams(
            # Independent per-block partial sums -> safe to shard across TCs.
            dimension_semantics=("parallel",),
        ),
    )(pred2d, true2d)

    total_sum = jnp.sum(partials, dtype=jnp.float32)
    if reduction == "mean":
        return total_sum / jnp.float32(total)
    elif reduction == "sum":
        return total_sum
    # TODO(synk): reduction='none' (per-element loss output) not implemented
    # in this reduction-oriented kernel; default BCEWithLogitsLoss uses 'mean'.
    raise NotImplementedError("reduction='none' not supported")


def _focal_loss_ref(pred, true, gamma=GAMMA, alpha=ALPHA):
    x = pred.astype(jnp.float32)
    y = true.astype(jnp.float32)
    bce = jnp.maximum(x, 0.0) - x * y + jnp.log1p(jnp.exp(-jnp.abs(x)))
    p = jax.nn.sigmoid(x)
    p_t = y * p + (1.0 - y) * (1.0 - p)
    alpha_factor = y * alpha + (1.0 - y) * (1.0 - alpha)
    loss = bce * alpha_factor * (1.0 - p_t) ** gamma
    return jnp.mean(loss)


if __name__ == "__main__":
    key = jax.random.PRNGKey(0)
    k1, k2 = jax.random.split(key)

    # Detection-style head logits: NCHW [2, 4, 16, 16]
    shape = (2, 4, 16, 16)
    pred = jax.random.normal(k1, shape, dtype=jnp.float32) * 2.0
    true = (jax.random.uniform(k2, shape) > 0.7).astype(jnp.float32)

    out = focal_loss(pred, true)
    out = jax.block_until_ready(out)

    ref = _focal_loss_ref(pred, true)
    assert jnp.allclose(out, ref, rtol=1e-5, atol=1e-6), (out, ref)

    # Also exercise the padded / multi-block path with a non-tile-aligned size.
    k3, k4 = jax.random.split(k1)
    shape2 = (3, 5, 17, 19)  # 4845 elements -> needs padding + masking
    pred2 = jax.random.normal(k3, shape2, dtype=jnp.float32) * 2.0
    true2 = (jax.random.uniform(k4, shape2) > 0.5).astype(jnp.float32)
    out2 = jax.block_until_ready(focal_loss(pred2, true2))
    ref2 = _focal_loss_ref(pred2, true2)
    assert jnp.allclose(out2, ref2, rtol=1e-5, atol=1e-6), (out2, ref2)

    print("KERNEL_OK")
</pallas_src>

<mosaic_0001>
module attributes {stable_mosaic.version = 11 : i64} {
  func.func @_focal_loss_kernel(%arg0: i32, %arg1: memref<16x128xf32, #tpu.memory_space<vmem>>, %arg2: memref<16x128xf32, #tpu.memory_space<vmem>>, %arg3: memref<1x8x128xf32, #tpu.memory_space<vmem>>) attributes {dimension_semantics = [#tpu.dimension_semantics<parallel>], iteration_bounds = array<i64: 1>, scalar_prefetch = 0 : i64, scratch_operands = 0 : i64, tpu.core_type = #tpu.core_type<tc>, window_params = [{transform_indices = @transform_0, window_bounds = array<i64: 16, 128>}, {transform_indices = @transform_1, window_bounds = array<i64: 16, 128>}, {transform_indices = @transform_2, window_bounds = array<i64: 1, 8, 128>}]} {
    %c0 = arith.constant 0 : index
    %c0_0 = arith.constant 0 : index
    %0 = vector.load %arg1[%c0, %c0_0] : memref<16x128xf32, #tpu.memory_space<vmem>>, vector<16x128xf32>
    %c0_1 = arith.constant 0 : index
    %c0_2 = arith.constant 0 : index
    %1 = vector.load %arg2[%c0_1, %c0_2] : memref<16x128xf32, #tpu.memory_space<vmem>>, vector<16x128xf32>
    %2 = math.absf %0 : vector<16x128xf32>
    %cst = arith.constant 0.000000e+00 : f32
    %3 = vector.broadcast %cst : f32 to vector<16x128xf32>
    %4 = arith.subf %3, %2 : vector<16x128xf32>
    %5 = math.exp %4 : vector<16x128xf32>
    %cst_3 = arith.constant 0.000000e+00 : f32
    %6 = vector.broadcast %cst_3 : f32 to vector<16x128xf32>
    %7 = arith.maximumf %0, %6 : vector<16x128xf32>
    %8 = arith.mulf %0, %1 : vector<16x128xf32>
    %9 = arith.subf %7, %8 : vector<16x128xf32>
    %10 = math.log1p %5 : vector<16x128xf32>
    %11 = arith.addf %9, %10 : vector<16x128xf32>
    %cst_4 = arith.constant 0.000000e+00 : f32
    %12 = vector.broadcast %cst_4 : f32 to vector<16x128xf32>
    %13 = arith.cmpf oge, %0, %12 : vector<16x128xf32>
    %cst_5 = arith.constant 1.000000e+00 : f32
    %14 = vector.broadcast %cst_5 : f32 to vector<16x128xf32>
    %15 = arith.select %13, %14, %5 : vector<16x128xi1>, vector<16x128xf32>
    %cst_6 = arith.constant 1.000000e+00 : f32
    %16 = vector.broadcast %cst_6 : f32 to vector<16x128xf32>
    %17 = arith.addf %16, %5 : vector<16x128xf32>
    %18 = arith.divf %15, %17 : vector<16x128xf32>
    %19 = arith.mulf %1, %18 : vector<16x128xf32>
    %cst_7 = arith.constant 1.000000e+00 : f32
    %20 = vector.broadcast %cst_7 : f32 to vector<16x128xf32>
    %21 = arith.subf %20, %1 : vector<16x128xf32>
    %cst_8 = arith.constant 1.000000e+00 : f32
    %22 = vector.broadcast %cst_8 : f32 to vector<16x128xf32>
    %23 = arith.subf %22, %18 : vector<16x128xf32>
    %24 = arith.mulf %21, %23 : vector<16x128xf32>
    %25 = arith.addf %19, %24 : vector<16x128xf32>
    %cst_9 = arith.constant 2.500000e-01 : f32
    %26 = vector.broadcast %cst_9 : f32 to vector<16x128xf32>
    %27 = arith.mulf %1, %26 : vector<16x128xf32>
    %cst_10 = arith.constant 1.000000e+00 : f32
    %28 = vector.broadcast %cst_10 : f32 to vector<16x128xf32>
    %29 = arith.subf %28, %1 : vector<16x128xf32>
    %cst_11 = arith.constant 7.500000e-01 : f32
    %30 = vector.broadcast %cst_11 : f32 to vector<16x128xf32>
    %31 = arith.mulf %29, %30 : vector<16x128xf32>
    %32 = arith.addf %27, %31 : vector<16x128xf32>
    %cst_12 = arith.constant 1.000000e+00 : f32
    %33 = vector.broadcast %cst_12 : f32 to vector<16x128xf32>
    %34 = arith.subf %33, %25 : vector<16x128xf32>
    %35 = math.sqrt %34 : vector<16x128xf32>
    %36 = arith.mulf %34, %35 : vector<16x128xf32>
    %37 = arith.mulf %11, %32 : vector<16x128xf32>
    %38 = arith.mulf %37, %36 : vector<16x128xf32>
    %39 = vector.shape_cast %38 : vector<16x128xf32> to vector<2x8x128xf32>
    %cst_13 = arith.constant dense<0.000000e+00> : vector<8x128xf32>
    %40 = vector.multi_reduction <add>, %39, %cst_13 [0] : vector<2x8x128xf32> to vector<8x128xf32>
    %41 = vector.shape_cast %40 : vector<8x128xf32> to vector<1x8x128xf32>
    %c0_14 = arith.constant 0 : index
    %c0_15 = arith.constant 0 : index
    %c0_16 = arith.constant 0 : index
    %42 = vector.load %arg3[%c0_14, %c0_15, %c0_16] : memref<1x8x128xf32, #tpu.memory_space<vmem>>, vector<1x8x128xf32>
    tpu.vector_store %arg3[%c0_14, %c0_15, %c0_16], %41 {strides = array<i32>} : memref<1x8x128xf32, #tpu.memory_space<vmem>>, vector<1x8x128xf32>,
    return
  }
  func.func @transform_0(%arg0: i32) -> (i32, i32) {
    %c0_i32 = arith.constant 0 : i32
    %c0_i32_0 = arith.constant 0 : i32
    return %arg0, %c0_i32 : i32, i32
  }
  func.func @transform_1(%arg0: i32) -> (i32, i32) {
    %c0_i32 = arith.constant 0 : i32
    %c0_i32_0 = arith.constant 0 : i32
    return %arg0, %c0_i32 : i32, i32
  }
  func.func @transform_2(%arg0: i32) -> (i32, i32, i32) {
    %c0_i32 = arith.constant 0 : i32
    %c0_i32_0 = arith.constant 0 : i32
    %c0_i32_1 = arith.constant 0 : i32
    return %arg0, %c0_i32, %c0_i32_0 : i32, i32, i32
  }
}

</mosaic_0001>

<bundles_post_ra>
// kernel: tpu_custom_call.1
= control target key start
LH: loop header
LB: loop body
LE: loop exit
PB: predicated region body
PF: predicated region fallthrough
CT: control target
= control target key end

     0   :  { %7 = vsyncpa [#allocation3], 0  ;;  %s299_s0 = inlined_call_operand.hbm [shape: f32[16,128], index: 0, kind: input, shape index: {}]   ;;  %s300_s1 = inlined_call_operand.hbm [shape: f32[16,128], index: 1, kind: input, shape index: {}]   ;;  %s301_s2 = inlined_call_operand.hbm [shape: f32[1,8,128], index: 2, kind: output, shape index: {}]  }
   0x1   :  { %8 = vsyncpa [#allocation6], 0 }
   0x2   :  { %9 = vsyncpa [#allocation4], 0  ;;  %s237_s9 = smov [#allocation2]   ;;  %s165_s13 = scalar_lea.hbm %s299_s0, 256 }
   0x3   :  { %s15_s10 = sshll.u32 %s237_s9, 4  ;;  %p166_p0 = scmp.ne.s32.totalorder %s299_s0, %s165_s13  ;;  %s16_s10 = int_to_ptr.vmem [resolvable:$true] %s15_s10 }
   0x4   :  { %p169_p1 = scmp.lt.u32.totalorder %s165_s13, %s299_s0 }
   0x6   :  { %p171_p2 = pnand %p169_p1, %p166_p0 }
   0x8   :  { %174 = shalt.err (!%p171_p2)
}
   0x9   :  { %s175_s18 = scalar_lea.vmem %s16_s10, 256  ;;  %p180_p4 = scmp.lt.s32.totalorder %s16_s10, %s16_s10 }
   0xa   :  { %p176_p3 = scmp.ne.s32.totalorder %s16_s10, %s175_s18  ;;  %p181_p5 = scmp.lt.s32.totalorder %s175_s18, %s175_s18 }
   0xc   :  { %p182_p6 = por %p181_p5, %p180_p4 }
   0xe   :  { %p183_p7 = pnand %p182_p6, %p176_p3 }
  0x10   :  { %186 = shalt.err (!%p183_p7)
}
  0x11   :  { %s238_s19 = smov 128   ;;  %s239_s20 = smov 8  }
  0x12   :  { %21 = dma.hbm_to_vmem [thread:$0]  %s299_s0, 256, %s16_s10, [#allocation3], %s238_s19, %s238_s19, %s239_s20  }
  0x13   :  { %s240_s23 = smov [#allocation5]   ;;  %s187_s27 = scalar_lea.hbm %s300_s1, 256 }
  0x14   :  { %s27_s24 = sshll.u32 %s240_s23, 4  ;;  %p188_p8 = scmp.ne.s32.totalorder %s300_s1, %s187_s27  ;;  %s28_s24 = int_to_ptr.vmem [resolvable:$true] %s27_s24 }
  0x15   :  { %p191_p9 = scmp.lt.u32.totalorder %s187_s27, %s300_s1 }
  0x17   :  { %p193_p10 = pnand %p191_p9, %p188_p8 }
  0x19   :  { %196 = shalt.err (!%p193_p10)
}
  0x1a   :  { %s197_s4 = scalar_lea.vmem %s28_s24, 256  ;;  %p202_p12 = scmp.lt.s32.totalorder %s28_s24, %s28_s24 }
  0x1b   :  { %p198_p11 = scmp.ne.s32.totalorder %s28_s24, %s197_s4  ;;  %p203_p13 = scmp.lt.s32.totalorder %s197_s4, %s197_s4 }
  0x1d   :  { %p204_p0 = por %p203_p13, %p202_p12 }
  0x1f   :  { %p205_p1 = pnand %p204_p0, %p198_p11 }
  0x21   :  { %208 = shalt.err (!%p205_p1)
}
  0x22   :  { %33 = dma.hbm_to_vmem [thread:$0]  %s300_s1, 256, %s28_s24, [#allocation6], %s238_s19, %s238_s19, %s239_s20  }
  0x23   :  { %231 = dma.done.wait [#allocation3], 256  }
  0x24   :  { %232 = vsyncadd [#allocation3], 4294967040 }
  0x25   :  { %233 = dma.done.wait [#allocation6], 256  }
  0x26   :  { %234 = vsyncadd [#allocation6], 4294967040  ;;  %v40_v0 = vld [vmem:[#allocation2] sm:$0xff]  ;;  %v281_v1 = vld [vmem:[#allocation2 + $0x8] sm:$0xff]  ;;  %s241_s1 = smov [#allocation7]  }
  0x27   :  { %v44_v2 = vand.u32 2147483647, %v40_v0  ;;  %v45_v3 = vand.u32 2147483647, %v281_v1  ;;  %vm78_vm0 = vcmp.ge.f32.partialorder %v40_v0, 0.0  ;;  %vm79_vm1 = vcmp.ge.f32.partialorder %v281_v1, 0.0 }
  0x28   :  { %v42_v12 = vld [vmem:[#allocation5] sm:$0xff]  ;;  %v43_v14 = vld [vmem:[#allocation5 + $0x8] sm:$0xff]  ;;  %v52_v40 = vmax.f32 %v40_v0, 0.0  ;;  %v53_v42 = vmax.f32 %v281_v1, 0.0  ;;  %s134_s6 = sshll.u32 %s241_s1, 4  ;;  %s135_s6 = int_to_ptr.vmem [resolvable:$true] %s134_s6 }
  0x29   :  { %v46_v4 = vsub.f32 0.0, %v44_v2  ;;  %v47_v5 = vsub.f32 0.0, %v45_v3  ;;  %v90_v19 = vsub.f32 1.0, %v42_v12  ;;  %v91_v21 = vsub.f32 1.0, %v43_v14  ;;  %s209_s7 = scalar_lea.vmem %s135_s6, 128  ;;  %p214_p3 = scmp.lt.s32.totalorder %s135_s6, %s135_s6 }
  0x2a   :  { %v54_v41 = vmul.f32 %v42_v12, %v40_v0  ;;  %v55_v43 = vmul.f32 %v43_v14, %v281_v1  ;;  %v98_v49 = vmul.f32 0.25, %v42_v12  ;;  %v99_v53 = vmul.f32 0.25, %v43_v14  ;;  %p210_p2 = scmp.ne.s32.totalorder %s135_s6, %s209_s7  ;;  %p215_p4 = scmp.lt.s32.totalorder %s209_s7, %s209_s7 }
  0x2b   :  { %v48_v6 = vmul.f32 1.442695, %v46_v4  ;;  %v50_v7 = vmul.f32 1.442695, %v47_v5  ;;  %v100_v50 = vmul.f32 0.75, %v90_v19  ;;  %v101_v54 = vmul.f32 0.75, %v91_v21 }
  0x2c   :  { %v56_v48 = vsub.f32 %v52_v40, %v54_v41  ;;  %v57_v51 = vsub.f32 %v53_v42, %v55_v43  ;;  %p216_p5 = por %p215_p4, %p214_p3 }
  0x2d   :  { %149 = vpow2.f32 %v48_v6  ;;  %v102_v57 = vadd.f32 %v100_v50, %v98_v49  ;;  %v103_v60 = vadd.f32 %v101_v54, %v99_v53 }
  0x2e   :  { %151 = vpow2.f32 %v50_v7  ;;  %p217_p6 = pnand %p216_p5, %p210_p2 }
  0x37   :  { %v150_v8 = vpop.eup %149 }
  0x38   :  { %v152_v9 = vpop.eup %151  ;;  %v58_v10 = vadd.f32 1.0, %v150_v8  ;;  %v80_v13 = vsel %vm78_vm0, 1.0, %v150_v8  ;;  %v61_v26 = vmul.f32 -0.5, %v150_v8  ;;  %v64_v35 = vand.u32 2147483647, %v150_v8 }
  0x39   :  { %v67_v11 = vadd.f32 1.0, %v152_v9  ;;  %v81_v15 = vsel %vm79_vm1, 1.0, %v152_v9  ;;  %v70_v28 = vmul.f32 -0.5, %v152_v9  ;;  %v73_v39 = vand.u32 2147483647, %v152_v9 }
  0x3a   :  { %153 = vrcp.f32 %v58_v10  ;;  %v62_v32 = vadd.f32 1.0, %v61_v26  ;;  %vm65_vm2 = vcmp.lt.f32.partialorder %v64_v35, 0.0004427343 }
  0x3b   :  { %155 = vrcp.f32 %v67_v11  ;;  %v71_v36 = vadd.f32 1.0, %v70_v28  ;;  %vm74_vm3 = vcmp.lt.f32.partialorder %v73_v39, 0.0004427343 }
  0x3c   :  { %157 = vlog2.f32 %v58_v10  ;;  %v63_v45 = vmul.f32 %v150_v8, %v62_v32 }
  0x3d   :  { %159 = vlog2.f32 %v67_v11  ;;  %v72_v47 = vmul.f32 %v152_v9, %v71_v36 }
  0x44   :  { %v154_v16 = vpop.eup %153 }
  0x45   :  { %v156_v17 = vpop.eup %155  ;;  %v85_v18 = vmul.f32 %v154_v16, %v80_v13 }
  0x46   :  { %v87_v20 = vmul.f32 %v156_v17, %v81_v15  ;;  %v158_v34 = vpop.eup %157 }
  0x47   :  { %v88_v22 = vmul.f32 %v85_v18, %v42_v12  ;;  %v92_v23 = vsub.f32 1.0, %v85_v18  ;;  %v160_v38 = vpop.eup %159  ;;  %v60_v44 = vmul.f32 0.6931472, %v158_v34 }
  0x48   :  { %v89_v24 = vmul.f32 %v87_v20, %v43_v14  ;;  %v93_v25 = vsub.f32 1.0, %v87_v20  ;;  %v69_v46 = vmul.f32 0.6931472, %v160_v38 }
  0x49   :  { %v94_v27 = vmul.f32 %v92_v23, %v90_v19  ;;  %v66_v52 = vsel %vm65_vm2, %v63_v45, %v60_v44 }
  0x4a   :  { %v95_v29 = vmul.f32 %v93_v25, %v91_v21  ;;  %v75_v55 = vsel %vm74_vm3, %v72_v47, %v69_v46  ;;  %v76_v56 = vadd.f32 %v66_v52, %v56_v48 }
  0x4b   :  { %v96_v30 = vadd.f32 %v94_v27, %v88_v22  ;;  %v77_v59 = vadd.f32 %v75_v55, %v57_v51 }
  0x4c   :  { %v97_v31 = vadd.f32 %v95_v29, %v89_v24  ;;  %v122_v3 = vmul.f32 %v102_v57, %v76_v56 }
  0x4d   :  { %v104_v33 = vsub.f32 1.0, %v96_v30  ;;  %v123_v6 = vmul.f32 %v103_v60, %v77_v59 }
  0x4e   :  { %v105_v37 = vsub.f32 1.0, %v97_v31 }
  0x4f   :  { %161 = vrsqrt.f32 %v104_v33  ;;  %vm108_vm4 = vcmp.eq.f32.partialorder %v104_v33, inf  ;;  %v111_v61 = vand.u32 2147483648, %v104_v33  ;;  %vm110_vm5 = vcmp.eq.f32.partialorder %v104_v33, 0.0 }
  0x50   :  { %163 = vrsqrt.f32 %v105_v37  ;;  %vm115_vm6 = vcmp.eq.f32.partialorder %v105_v37, inf  ;;  %v118_v0 = vand.u32 2147483648, %v105_v37  ;;  %vm117_vm7 = vcmp.eq.f32.partialorder %v105_v37, 0.0 }
  0x59   :  { %v162_v58 = vpop.eup %161 }
  0x5a   :  { %v164_v62 = vpop.eup %163  ;;  %v107_v63 = vmul.f32 %v162_v58, %v104_v33 }
  0x5b   :  { %v114_v1 = vmul.f32 %v164_v62, %v105_v37 }
  0x5c   :  { %v109_v2 = vsel %vm108_vm4, %v104_v33, %v107_v63 }
  0x5d   :  { %v112_v4 = vsel %vm110_vm5, %v111_v61, %v109_v2  ;;  %v116_v5 = vsel %vm115_vm6, %v105_v37, %v114_v1 }
  0x5e   :  { %v119_v7 = vsel %vm117_vm7, %v118_v0, %v116_v5  ;;  %v120_v8 = vmul.f32 %v112_v4, %v104_v33 }
  0x5f   :  { %v121_v9 = vmul.f32 %v119_v7, %v105_v37 }
  0x60   :  { %v124_v10 = vmul.f32 %v122_v3, %v120_v8 }
  0x61   :  { %v125_v11 = vmul.f32 %v123_v6, %v121_v9 }
  0x63   :  { %v126_v12 = vadd.f32 %v125_v11, %v124_v10 }
  0x65   :  { %127 = vst [vmem:[#allocation7] sm:$0xff] %v126_v12 }
  0x66   :  { %220 = shalt.err (!%p217_p6)
}
  0x67   :  { %s221_s10 = scalar_lea.hbm %s301_s2, 128 }
  0x68   :  { %p222_p7 = scmp.ne.s32.totalorder %s301_s2, %s221_s10  ;;  %p225_p8 = scmp.lt.u32.totalorder %s221_s10, %s301_s2 }
  0x6a   :  { %p227_p9 = pnand %p225_p8, %p222_p7 }
  0x6c   :  { %230 = shalt.err (!%p227_p9)
}
  0x6d   :  { %137 = dma.vmem_to_hbm [thread:$0]  %s135_s6, 128, %s301_s2, [#allocation4]  }
  0x6e   :  { %235 = dma.done.wait [#allocation4], 128  }
  0x6f   :  { %236 = vsyncadd [#allocation4], 4294967168 }
  0x70   :  { %141 = vsyncpa [#allocation3], 1 }
  0x71   :  { %142 = vsyncpa [#allocation6], 1 }
  0x72   :  { %143 = vsyncpa [#allocation4], 1 }

</bundles_post_ra>
